<compile_context>
chip_gen: v5e
topology: v5e:2x2
jax: 0.10.0
libtpu: 0.0.40
codegen_flags: <defaults>
</compile_context>

<pallas_src>
import numpy as np
import jax
import jax.numpy as jnp
from jax.experimental import pallas as pl
from jax.experimental.pallas import tpu as pltpu

EPS = 1e-5


def conv_pool_bn_kernel(patchesT_ref, pool_ref, wT_ref, gb_ref, o_ref):
    # Pooling applied to the patches first (pool and conv are both linear):
    # (K, M1) @ (M1, M2) -> (K, M2); pool matrix holds 1/9 per contribution.
    pooled_patches = jnp.dot(patchesT_ref[...], pool_ref[...],
                             preferred_element_type=jnp.float32)
    # Conv as one MXU matmul on the pooled patches: (Cout, K) @ (K, M2) -> (Cout, M2).
    p = jnp.dot(wT_ref[...], pooled_patches, preferred_element_type=jnp.float32)
    # BatchNorm2d training mode: per-channel (sublane) stats reduced over the
    # lane axis (= N*QH*QW), biased variance, one fused scale/shift.
    m2 = p.shape[-1]
    mean = jnp.sum(p, axis=-1, keepdims=True) * (1.0 / m2)        # (Cout, 1)
    c = p - mean
    var = jnp.sum(c * c, axis=-1, keepdims=True) * (1.0 / m2)     # (Cout, 1)
    gb = gb_ref[...]                                              # (Cout, 2)
    gamma = gb[:, 0:1]
    beta = gb[:, 1:2]
    scale = jax.lax.rsqrt(var + EPS) * gamma                      # (Cout, 1)
    o_ref[...] = c * scale + beta                                 # (Cout, M2)


def _vmem_spec():
    return pl.BlockSpec(memory_space=pltpu.MemorySpace.VMEM)


def model_forward(x, weight, gamma, beta):
    """x: (N, 32, H, W) f32; weight: (32, 32, 2, 2); gamma/beta: (32,)."""
    N, C, H, W = x.shape
    Cout, Cin, KH, KW = weight.shape
    assert C == Cin and (KH, KW) == (2, 2)
    pad, stride = 2, 2

    # ---- Conv geometry (stride == kernel -> exact tiling of the padded input).
    x_pad = jnp.pad(x, ((0, 0), (0, 0), (pad, pad), (pad, pad)))
    Hp, Wp = H + 2 * pad, W + 2 * pad
    assert Hp % stride == 0 and Wp % stride == 0
    OH, OW = Hp // stride, Wp // stride
    K = Cin * KH * KW                       # 128 = one MXU tile on contraction
    M1 = N * OH * OW

    # im2col, transposed: (K, M1), K ordered (ci, kh, kw) to match the flattened
    # weight, M1 ordered (n, oh, ow).
    patchesT = (
        x_pad.reshape(N, Cin, OH, KH, OW, KW)
        .transpose(1, 3, 5, 0, 2, 4)
        .reshape(K, M1)
    )
    wT = weight.reshape(Cout, K)            # (Cout, K)

    # ---- AvgPool2d(3, padding=1): stride 3, ceil_mode=False, count_include_pad.
    PH, PW = OH + 2, OW + 2
    assert PH % 3 == 0 and PW % 3 == 0      # exact tiling of the padded conv out
    QH, QW = PH // 3, PW // 3
    M2 = N * QH * QW
    pool_np = np.zeros((M1, M2), dtype=np.float32)
    for n in range(N):
        for oh in range(OH):
            qh = (oh + 1) // 3              # +1 for padding = 1
            for ow in range(OW):
                qw = (ow + 1) // 3
                pool_np[n * OH * OW + oh * OW + ow,
                        n * QH * QW + qh * QW + qw] = 1.0 / 9.0
    pool = jnp.asarray(pool_np)

    # gamma/beta packed into a single (Cout, 2) operand (fewer input DMAs).
    gb = jnp.stack([gamma, beta], axis=1).astype(jnp.float32)

    out2d = pl.pallas_call(
        conv_pool_bn_kernel,
        out_shape=jax.ShapeDtypeStruct((Cout, M2), jnp.float32),
        # No grid: a single block; full arrays resident in VMEM.
        in_specs=[_vmem_spec(), _vmem_spec(), _vmem_spec(), _vmem_spec()],
        out_specs=_vmem_spec(),
        compiler_params=pltpu.CompilerParams(
            # Allow XLA to fuse the pad/reshape/transpose im2col glue into the
            # input DMA of the patches operand; the rest are tiny params.
            allow_input_fusion=[True, False, False, False]),
        cost_estimate=pl.CostEstimate(
            flops=2 * K * M1 * M2 + 2 * Cout * K * M2,
            transcendentals=Cout,
            bytes_accessed=4 * (K * M1 + M1 * M2 + Cout * K + 2 * Cout + Cout * M2)),
    )(patchesT.astype(jnp.float32), pool, wT.astype(jnp.float32), gb)

    # (Cout, N*QH*QW) -> (N, Cout, QH, QW).  For N == 1 this is a pure reshape.
    return out2d.reshape(Cout, N, QH, QW).transpose(1, 0, 2, 3)


def reference_forward(x, weight, gamma, beta):
    """Pure-JAX reference: conv(s2,p2,no bias) + AvgPool2d(3,pad1) + training BN."""
    y = jax.lax.conv_general_dilated(
        x, weight, window_strides=(2, 2), padding=((2, 2), (2, 2)),
        dimension_numbers=("NCHW", "OIHW", "NCHW"),
        precision=jax.lax.Precision.HIGHEST)
    yp = jnp.pad(y, ((0, 0), (0, 0), (1, 1), (1, 1)))
    N, C, PH, PW = yp.shape
    pooled = yp.reshape(N, C, PH // 3, 3, PW // 3, 3).mean(axis=(3, 5))
    mean = jnp.mean(pooled, axis=(0, 2, 3), keepdims=True)
    var = jnp.mean((pooled - mean) ** 2, axis=(0, 2, 3), keepdims=True)
    return (pooled - mean) * jax.lax.rsqrt(var + EPS) * gamma.reshape(1, -1, 1, 1) \
        + beta.reshape(1, -1, 1, 1)


if __name__ == "__main__":
    key = jax.random.PRNGKey(0)
    kx, kw, kg, kb = jax.random.split(key, 4)

    # Small input consistent with the module: Conv2d expects 32 input channels.
    x = jax.random.normal(kx, (2, 32, 16, 16), dtype=jnp.float32)

    # conv1.weight ~ U(-1/sqrt(fan_in), 1/sqrt(fan_in)); non-trivial BN affine.
    fan_in = 32 * 2 * 2
    bound = 1.0 / (fan_in ** 0.5)
    weight = jax.random.uniform(kw, (32, 32, 2, 2), minval=-bound, maxval=bound,
                                dtype=jnp.float32)
    gamma = 1.0 + 0.1 * jax.random.normal(kg, (32,), dtype=jnp.float32)
    beta = 0.1 * jax.random.normal(kb, (32,), dtype=jnp.float32)

    fwd = jax.jit(model_forward)
    out = jax.block_until_ready(fwd(x, weight, gamma, beta))

    ref = reference_forward(x, weight, gamma, beta)
    assert out.shape == (2, 32, 4, 4), out.shape
    assert jnp.allclose(out, ref, atol=2e-4, rtol=2e-4), \
        float(jnp.max(jnp.abs(out - ref)))

    # TODO(synk): BatchNorm running-stat updates are module state (no effect on
    # the forward output) and are not modeled.
    print("KERNEL_OK")
</pallas_src>

<mosaic_0001>
module attributes {stable_mosaic.version = 11 : i64} {
  func.func @conv_pool_bn_kernel(%arg0: memref<128x200xf32, #tpu.memory_space<vmem>>, %arg1: memref<200x32xf32, #tpu.memory_space<vmem>>, %arg2: memref<32x128xf32, #tpu.memory_space<vmem>>, %arg3: memref<32x2xf32, #tpu.memory_space<vmem>>, %arg4: memref<32x32xf32, #tpu.memory_space<vmem>>) attributes {dimension_semantics = [], scalar_prefetch = 0 : i64, scratch_operands = 0 : i64, tpu.core_type = #tpu.core_type<tc>} {
    %c0 = arith.constant 0 : index
    %c0_0 = arith.constant 0 : index
    %0 = vector.load %arg0[%c0, %c0_0] : memref<128x200xf32, #tpu.memory_space<vmem>>, vector<128x200xf32>
    %c0_1 = arith.constant 0 : index
    %c0_2 = arith.constant 0 : index
    %1 = vector.load %arg1[%c0_1, %c0_2] : memref<200x32xf32, #tpu.memory_space<vmem>>, vector<200x32xf32>
    %cst = arith.constant dense<0.000000e+00> : vector<128x32xf32>
    %2 = tpu.matmul %0, %1, %cst {dimension_numbers = #tpu.dot_dimension_numbers<[1], [0], [0], [1], [0, 0, 1, 1], [], []>} : vector<128x200xf32>, vector<200x32xf32>, vector<128x32xf32> -> vector<128x32xf32>
    %c0_3 = arith.constant 0 : index
    %c0_4 = arith.constant 0 : index
    %3 = vector.load %arg2[%c0_3, %c0_4] : memref<32x128xf32, #tpu.memory_space<vmem>>, vector<32x128xf32>
    %cst_5 = arith.constant dense<0.000000e+00> : vector<32x32xf32>
    %4 = tpu.matmul %3, %2, %cst_5 {dimension_numbers = #tpu.dot_dimension_numbers<[1], [0], [0], [1], [0, 0, 1, 1], [], []>} : vector<32x128xf32>, vector<128x32xf32>, vector<32x32xf32> -> vector<32x32xf32>
    %cst_6 = arith.constant dense<0.000000e+00> : vector<32xf32>
    %5 = vector.multi_reduction <add>, %4, %cst_6 [1] : vector<32x32xf32> to vector<32xf32>
    %6 = vector.shape_cast %5 : vector<32xf32> to vector<32x1xf32>
    %cst_7 = arith.constant 3.125000e-02 : f32
    %7 = vector.broadcast %cst_7 : f32 to vector<32x1xf32>
    %8 = arith.mulf %6, %7 : vector<32x1xf32>
    %9 = vector.broadcast %8 : vector<32x1xf32> to vector<32x32xf32>
    %10 = arith.subf %4, %9 : vector<32x32xf32>
    %11 = arith.mulf %10, %10 : vector<32x32xf32>
    %cst_8 = arith.constant dense<0.000000e+00> : vector<32xf32>
    %12 = vector.multi_reduction <add>, %11, %cst_8 [1] : vector<32x32xf32> to vector<32xf32>
    %13 = vector.shape_cast %12 : vector<32xf32> to vector<32x1xf32>
    %cst_9 = arith.constant 3.125000e-02 : f32
    %14 = vector.broadcast %cst_9 : f32 to vector<32x1xf32>
    %15 = arith.mulf %13, %14 : vector<32x1xf32>
    %c0_10 = arith.constant 0 : index
    %c0_11 = arith.constant 0 : index
    %16 = vector.load %arg3[%c0_10, %c0_11] : memref<32x2xf32, #tpu.memory_space<vmem>>, vector<32x2xf32>
    %17 = vector.extract_strided_slice %16 {offsets = [0, 0], sizes = [32, 1], strides = [1, 1]} : vector<32x2xf32> to vector<32x1xf32>
    %18 = vector.extract_strided_slice %16 {offsets = [0, 1], sizes = [32, 1], strides = [1, 1]} : vector<32x2xf32> to vector<32x1xf32>
    %cst_12 = arith.constant 9.99999974E-6 : f32
    %19 = vector.broadcast %cst_12 : f32 to vector<32x1xf32>
    %20 = arith.addf %15, %19 : vector<32x1xf32>
    %21 = math.rsqrt %20 : vector<32x1xf32>
    %22 = arith.mulf %21, %17 : vector<32x1xf32>
    %23 = vector.broadcast %22 : vector<32x1xf32> to vector<32x32xf32>
    %24 = arith.mulf %10, %23 : vector<32x32xf32>
    %25 = vector.broadcast %18 : vector<32x1xf32> to vector<32x32xf32>
    %26 = arith.addf %24, %25 : vector<32x32xf32>
    %c0_13 = arith.constant 0 : index
    %c0_14 = arith.constant 0 : index
    %27 = vector.load %arg4[%c0_13, %c0_14] : memref<32x32xf32, #tpu.memory_space<vmem>>, vector<32x32xf32>
    tpu.vector_store %arg4[%c0_13, %c0_14], %26 {strides = array<i32>} : memref<32x32xf32, #tpu.memory_space<vmem>>, vector<32x32xf32>,
    return
  }
}

</mosaic_0001>

<bundles_post_ra>
// kernel: model_forward.1
= control target key start
LH: loop header
LB: loop body
LE: loop exit
PB: predicated region body
PF: predicated region fallthrough
CT: control target
= control target key end

     0   :  { %vm74_vm0 = vcmask 588800   ;;  %vm286_vm1 = vcmask 261120   ;;  %s786_s1 = inlined_call_operand.vmem [shape: f32[200,32], index: 1, kind: input, shape index: {}]   ;;  %s787_s0 = inlined_call_operand.vmem [shape: f32[128,200], index: 0, kind: input, shape index: {}]   ;;  %s788_s2 = inlined_call_operand.vmem [shape: f32[32,128], index: 2, kind: input, shape index: {}]   ;;  %s789_s3 = inlined_call_operand.vmem [shape: f32[32,2], index: 3, kind: input, shape index: {}]   ;;  %s790_s4 = inlined_call_operand.vmem [shape: f32[32,32], index: 4, kind: output, shape index: {}]  }
   0x1   :  { %v64_v0 = vld [vmem:[%s786_s1 + $0x78] sm:$0xff]  ;;  %v73_v1 = vld [vmem:[%s786_s1 + $0xc0] sm:$0xff]  ;;  %v63_v2 = vld [vmem:[%s786_s1 + $0x70] sm:$0xff] }
   0x2   :  { %123 = vmatpush.msra.mxu0 %v64_v0  ;;  %451 = vmatpush.msra.mxu3 %v64_v0  ;;  %v72_v3 = vld [vmem:[%s786_s1 + $0xb8] sm:$0xff]  ;;  %v62_v4 = vld [vmem:[%s786_s1 + $0x68] sm:$0xff]  ;;  %v71_v5 = vld [vmem:[%s786_s1 + $0xb0] sm:$0xff] }
   0x3   :  { %195 = vmatpush.msra.mxu1 %v73_v1  ;;  %467 = vmatpush.msra.mxu2 %v73_v1  ;;  %v61_v6 = vld [vmem:[%s786_s1 + $0x60] sm:$0xff]  ;;  %v70_v7 = vld [vmem:[%s786_s1 + $0xa8] sm:$0xff]  ;;  %v60_v8 = vld [vmem:[%s786_s1 + $0x58] sm:$0xff] }
   0x4   :  { %124 = vmatpush.msra.mxu0 %v63_v2  ;;  %452 = vmatpush.msra.mxu3 %v63_v2  ;;  %v69_v9 = vld [vmem:[%s786_s1 + $0xa0] sm:$0xff]  ;;  %v59_v10 = vld [vmem:[%s786_s1 + $0x50] sm:$0xff]  ;;  %v68_v11 = vld [vmem:[%s786_s1 + $0x98] sm:$0xff] }
   0x5   :  { %196 = vmatpush.msra.mxu1 %v72_v3  ;;  %468 = vmatpush.msra.mxu2 %v72_v3  ;;  %v58_v12 = vld [vmem:[%s786_s1 + $0x48] sm:$0xff]  ;;  %v67_v13 = vld [vmem:[%s786_s1 + $0x90] sm:$0xff]  ;;  %v57_v14 = vld [vmem:[%s786_s1 + $0x40] sm:$0xff] }
   0x6   :  { %125 = vmatpush.msra.mxu0 %v62_v4  ;;  %453 = vmatpush.msra.mxu3 %v62_v4  ;;  %v66_v15 = vld [vmem:[%s786_s1 + $0x88] sm:$0xff]  ;;  %v56_v16 = vld [vmem:[%s786_s1 + $0x38] sm:$0xff]  ;;  %v65_v17 = vld [vmem:[%s786_s1 + $0x80] sm:$0xff] }
   0x7   :  { %197 = vmatpush.msra.mxu1 %v71_v5  ;;  %469 = vmatpush.msra.mxu2 %v71_v5  ;;  %v18_v18 = vld [vmem:[%s787_s0 + $0x8] sm:$0xff]  ;;  %v55_v19 = vld [vmem:[%s786_s1 + $0x30] sm:$0xff]  ;;  %v53_v22 = vld [vmem:[%s786_s1 + $0x20] sm:$0xff] }
   0x8   :  { %126 = vmatpush.msra.mxu0 %v61_v6  ;;  %454 = vmatpush.msra.mxu3 %v61_v6  ;;  %v38_v20 = vld [vmem:[%s787_s0 + $0xa8] sm:$0xff]  ;;  %v52_v23 = vld [vmem:[%s786_s1 + $0x18] sm:$0xff]  ;;  %v51_v25 = vld [vmem:[%s786_s1 + $0x10] sm:$0xff] }
   0x9   :  { %198 = vmatpush.msra.mxu1 %v70_v7  ;;  %470 = vmatpush.msra.mxu2 %v70_v7  ;;  %v54_v21 = vld [vmem:[%s786_s1 + $0x28] sm:$0xff]  ;;  %v20_v24 = vld [vmem:[%s787_s0 + $0x18] sm:$0xff]  ;;  %v49_v28 = vld [vmem:[%s786_s1] sm:$0xff] }
   0xa   :  { %127 = vmatpush.msra.mxu0 %v60_v8  ;;  %455 = vmatpush.msra.mxu3 %v60_v8  ;;  %v40_v26 = vld [vmem:[%s787_s0 + $0xb8] sm:$0xff]  ;;  %v50_v27 = vld [vmem:[%s786_s1 + $0x8] sm:$0xff]  ;;  %v17_v29 = vld [vmem:[%s787_s0] sm:$0xff] }
   0xb   :  { %199 = vmatpush.msra.mxu1 %v69_v9  ;;  %471 = vmatpush.msra.mxu2 %v69_v9  ;;  %v35_v30 = vld [vmem:[%s787_s0 + $0x90] sm:$0xff]  ;;  %v22_v31 = vld [vmem:[%s787_s0 + $0x28] sm:$0xff]  ;;  %v37_v34 = vld [vmem:[%s787_s0 + $0xa0] sm:$0xff] }
   0xc   :  { %128 = vmatpush.msra.mxu0 %v59_v10  ;;  %456 = vmatpush.msra.mxu3 %v59_v10  ;;  %v42_v32 = vld [vmem:[%s787_s0 + $0xc8] sm:$0xff]  ;;  %v19_v33 = vld [vmem:[%s787_s0 + $0x10] sm:$0xff]  ;;  %v24_v35 = vld [vmem:[%s787_s0 + $0x38] sm:$0xff] }
   0xd   :  { %200 = vmatpush.msra.mxu1 %v68_v11  ;;  %472 = vmatpush.msra.mxu2 %v68_v11  ;;  %v44_v36 = vld [vmem:[%s787_s0 + $0xd8] sm:$0xff]  ;;  %v21_v37 = vld [vmem:[%s787_s0 + $0x20] sm:$0xff]  ;;  %v39_v38 = vld [vmem:[%s787_s0 + $0xb0] sm:$0xff] }
   0xe   :  { %129 = vmatpush.msra.mxu0 %v58_v12  ;;  %457 = vmatpush.msra.mxu3 %v58_v12  ;;  %v26_v39 = vld [vmem:[%s787_s0 + $0x48] sm:$0xff]  ;;  %v23_v41 = vld [vmem:[%s787_s0 + $0x30] sm:$0xff]  ;;  %v41_v42 = vld [vmem:[%s787_s0 + $0xc0] sm:$0xff] }
   0xf   :  { %201 = vmatpush.msra.mxu1 %v67_v13  ;;  %473 = vmatpush.msra.mxu2 %v67_v13  ;;  %v46_v40 = vld [vmem:[%s787_s0 + $0xe8] sm:$0xff]  ;;  %v28_v43 = vld [vmem:[%s787_s0 + $0x58] sm:$0xff]  ;;  %v25_v45 = vld [vmem:[%s787_s0 + $0x40] sm:$0xff] }
  0x10   :  { %130 = vmatpush.msra.mxu0 %v57_v14  ;;  %458 = vmatpush.msra.mxu3 %v57_v14  ;;  %v48_v44 = vld [vmem:[%s787_s0 + $0xf8] sm:$0xff]  ;;  %v43_v46 = vld [vmem:[%s787_s0 + $0xd0] sm:$0xff]  ;;  %v30_v47 = vld [vmem:[%s787_s0 + $0x68] sm:$0xff] }
  0x11   :  { %202 = vmatpush.msra.mxu1 %v66_v15  ;;  %474 = vmatpush.msra.mxu2 %v66_v15  ;;  %v27_v48 = vld [vmem:[%s787_s0 + $0x50] sm:$0xff]  ;;  %v45_v49 = vld [vmem:[%s787_s0 + $0xe0] sm:$0xff]  ;;  %v32_v50 = vld [vmem:[%s787_s0 + $0x78] sm:$0xff] }
  0x12   :  { %131 = vmatpush.msra.mxu0 %v56_v16  ;;  %459 = vmatpush.msra.mxu3 %v56_v16  ;;  %v29_v51 = vld [vmem:[%s787_s0 + $0x60] sm:$0xff]  ;;  %v47_v52 = vld [vmem:[%s787_s0 + $0xf0] sm:$0xff]  ;;  %v34_v53 = vld [vmem:[%s787_s0 + $0x88] sm:$0xff] }
  0x13   :  { %203 = vmatpush.msra.mxu1 %v65_v17  ;;  %475 = vmatpush.msra.mxu2 %v65_v17  ;;  %v31_v54 = vld [vmem:[%s787_s0 + $0x70] sm:$0xff]  ;;  %v36_v55 = vld [vmem:[%s787_s0 + $0x98] sm:$0xff]  ;;  %v33_v56 = vld [vmem:[%s787_s0 + $0x80] sm:$0xff] }
  0x14   :  { %435 = vmatmul.msk.f32.vlgmr.msra.gmra.mxu1 %vm74_vm0, %v18_v18  ;;  %132 = vmatpush.msra.mxu0 %v55_v19 }
  0x15   :  { %460 = vmatpush.msra.mxu3 %v55_v19  ;;  %445 = vmatmul.msk.f32.vlgmr.msra.gmra.mxu2 %vm74_vm0, %v38_v20 }
  0x16   :  { %133 = vmatpush.msra.mxu0 %v54_v21 }
  0x17   :  { %461 = vmatpush.msra.mxu3 %v54_v21 }
  0x18   :  { %134 = vmatpush.msra.mxu0 %v53_v22 }
  0x19   :  { %462 = vmatpush.msra.mxu3 %v53_v22 }
  0x1a   :  { %135 = vmatpush.msra.mxu0 %v52_v23 }
  0x1b   :  { %463 = vmatpush.msra.mxu3 %v52_v23 }
  0x1c   :  { %436 = vmatmul.msk.f32.gmra.mxu1 %vm74_vm0, %v20_v24  ;;  %136 = vmatpush.msra.mxu0 %v51_v25 }
  0x1d   :  { %464 = vmatpush.msra.mxu3 %v51_v25  ;;  %446 = vmatmul.msk.f32.gmra.mxu2 %vm74_vm0, %v40_v26 }
  0x1e   :  { %137 = vmatpush.msra.mxu0 %v50_v27 }
  0x1f   :  { %465 = vmatpush.msra.mxu3 %v50_v27 }
  0x20   :  { %138 = vmatpush.msra.mxu0 %v49_v28 }
  0x21   :  { %466 = vmatpush.msra.mxu3 %v49_v28  ;;  %139 = vmatmul.f32.vlgmr.msra.gmra.mxu0 %v17_v29 }
  0x22   :  { %166 = vmatmul.f32.vlgmr.msra.gmra.mxu3 %v35_v30 }
  0x24   :  { %437 = vmatmul.msk.f32.gmra.mxu1 %vm74_vm0, %v22_v31 }
  0x25   :  { %447 = vmatmul.msk.f32.gmra.mxu2 %vm74_vm0, %v42_v32 }
  0x29   :  { %142 = vmatmul.f32.gmra.mxu0 %v19_v33 }
  0x2a   :  { %169 = vmatmul.f32.gmra.mxu3 %v37_v34 }
  0x2c   :  { %438 = vmatmul.msk.f32.gmra.mxu1 %vm74_vm0, %v24_v35 }
  0x2d   :  { %448 = vmatmul.msk.f32.gmra.mxu2 %vm74_vm0, %v44_v36 }
  0x31   :  { %145 = vmatmul.f32.gmra.mxu0 %v21_v37 }
  0x32   :  { %172 = vmatmul.f32.gmra.mxu3 %v39_v38 }
  0x34   :  { %439 = vmatmul.msk.f32.gmra.mxu1 %vm74_vm0, %v26_v39 }
  0x35   :  { %449 = vmatmul.msk.f32.gmra.mxu2 %vm74_vm0, %v46_v40 }
  0x39   :  { %148 = vmatmul.f32.gmra.mxu0 %v23_v41  ;;  %v253_v41 = vld [vmem:[%s788_s2] sm:$0xff] }
  0x3a   :  { %175 = vmatmul.f32.gmra.mxu3 %v41_v42  ;;  %v254_v42 = vld [vmem:[%s788_s2 + $0x8] sm:$0xff] }
  0x3c   :  { %440 = vmatmul.msk.f32.gmra.mxu1 %vm74_vm0, %v28_v43  ;;  %v255_v43 = vld [vmem:[%s788_s2 + $0x10] sm:$0xff] }
  0x3d   :  { %450 = vmatmul.msk.f32.gmra.mxu2 %vm74_vm0, %v48_v44  ;;  %v256_v44 = vld [vmem:[%s788_s2 + $0x18] sm:$0xff] }
  0x41   :  { %151 = vmatmul.f32.gmra.mxu0 %v25_v45 }
  0x42   :  { %178 = vmatmul.f32.gmra.mxu3 %v43_v46 }
  0x44   :  { %441 = vmatmul.msk.f32.gmra.mxu1 %vm74_vm0, %v30_v47 }
  0x49   :  { %154 = vmatmul.f32.gmra.mxu0 %v27_v48 }
  0x4a   :  { %181 = vmatmul.f32.gmra.mxu3 %v45_v49 }
  0x4c   :  { %442 = vmatmul.msk.f32.gmra.mxu1 %vm74_vm0, %v32_v50 }
  0x51   :  { %157 = vmatmul.f32.gmra.mxu0 %v29_v51 }
  0x52   :  { %184 = vmatmul.f32.gmra.mxu3 %v47_v52 }
  0x54   :  { %443 = vmatmul.msk.f32.gmra.mxu1 %vm74_vm0, %v34_v53 }
  0x59   :  { %160 = vmatmul.f32.gmra.mxu0 %v31_v54 }
  0x5c   :  { %444 = vmatmul.msk.f32.gmra.mxu1 %vm74_vm0, %v36_v55 }
  0x61   :  { %163 = vmatmul.f32.gmra.mxu0 %v33_v56 }
  0x91   :  { %v205_v57 = vpop.f32.mrf.mxu1 }
  0x98   :  { %v235_v62 = vpop.f32.mrf.mxu2 }
  0x99   :  { %v208_v58 = vpop.f32.mrf.mxu1 }
  0x9e   :  { %v140_v59 = vpop.f32.mrf.mxu0 }
  0x9f   :  { %v206_v60 = vadd.f32 %v205_v57, %v140_v59 }
  0xa0   :  { %v238_v3 = vpop.f32.mrf.mxu2 }
  0xa1   :  { %v211_v61 = vpop.f32.mrf.mxu1 }
  0xa5   :  { %v167_v63 = vpop.f32.mrf.mxu3 }
  0xa6   :  { %v143_v0 = vpop.f32.mrf.mxu0 }
  0xa7   :  { %v209_v1 = vadd.f32 %v208_v58, %v143_v0 }
  0xa8   :  { %v241_v8 = vpop.f32.mrf.mxu2 }
  0xa9   :  { %v214_v2 = vpop.f32.mrf.mxu1 }
  0xad   :  { %v170_v4 = vpop.f32.mrf.mxu3 }
  0xae   :  { %v146_v5 = vpop.f32.mrf.mxu0  ;;  %v236_v31 = vadd.f32 %v235_v62, %v170_v4 }
  0xaf   :  { %v212_v40 = vadd.f32 %v211_v61, %v146_v5 }
  0xb0   :  { %v244_v13 = vpop.f32.mrf.mxu2 }
  0xb1   :  { %v217_v6 = vpop.f32.mrf.mxu1 }
  0xb5   :  { %v173_v7 = vpop.f32.mrf.mxu3 }
  0xb6   :  { %v149_v9 = vpop.f32.mrf.mxu0  ;;  %v239_v29 = vadd.f32 %v238_v3, %v173_v7 }
  0xb7   :  { %v215_v39 = vadd.f32 %v214_v2, %v149_v9  ;;  %v495_v9 = vmov 0  }
  0xb8   :  { %v247_v17 = vpop.f32.mrf.mxu2  ;;  %478 = vset.pattern.permute.xlu2 %v495_v9  ;;  %479 = vset.pattern.permute.xlu0 %v495_v9 }
  0xb9   :  { %v220_v10 = vpop.f32.mrf.mxu1 }
  0xbd   :  { %v176_v11 = vpop.f32.mrf.mxu3 }
  0xbe   :  { %v152_v12 = vpop.f32.mrf.mxu0  ;;  %v242_v28 = vadd.f32 %v241_v8, %v176_v11  ;;  %v496_v11 = vmov 1  }
  0xbf   :  { %v218_v38 = vadd.f32 %v217_v6, %v152_v12  ;;  %481 = vset.pattern.permute.xlu1 %v496_v11 }
  0xc0   :  { %v250_v21 = vpop.f32.mrf.mxu2 }
  0xc1   :  { %v223_v14 = vpop.f32.mrf.mxu1 }
  0xc5   :  { %v179_v15 = vpop.f32.mrf.mxu3 }
  0xc6   :  { %v155_v16 = vpop.f32.mrf.mxu0  ;;  %v245_v27 = vadd.f32 %v244_v13, %v179_v15 }
  0xc7   :  { %v221_v37 = vadd.f32 %v220_v10, %v155_v16  ;;  %v328_v10 = vld [vmem:[%s789_s3 + $0x8] sm:$0xff] }
  0xc9   :  { %v226_v18 = vpop.f32.mrf.mxu1 }
  0xcd   :  { %v182_v19 = vpop.f32.mrf.mxu3 }
  0xce   :  { %v158_v20 = vpop.f32.mrf.mxu0  ;;  %v248_v26 = vadd.f32 %v247_v17, %v182_v19 }
  0xcf   :  { %v224_v36 = vadd.f32 %v223_v14, %v158_v20 }
  0xd1   :  { %v229_v22 = vpop.f32.mrf.mxu1 }
  0xd5   :  { %v185_v23 = vpop.f32.mrf.mxu3 }
  0xd6   :  { %v251_v24 = vadd.f32 %v250_v21, %v185_v23  ;;  %v161_v25 = vpop.f32.mrf.mxu0 }
  0xd7   :  { %v227_v35 = vadd.f32 %v226_v18, %v161_v25 }
  0xd8   :  { %257 = vmatpush.msrb.mxu2 %v251_v24 }
  0xd9   :  { %v232_v30 = vpop.f32.mrf.mxu1 }
  0xda   :  { %258 = vmatpush.msrb.mxu2 %v248_v26  ;;  %v233_v33 = vadd.f32 %v232_v30, %v167_v63 }
  0xdc   :  { %259 = vmatpush.msrb.mxu2 %v245_v27 }
  0xde   :  { %260 = vmatpush.msrb.mxu2 %v242_v28  ;;  %v164_v32 = vpop.f32.mrf.mxu0  ;;  %v327_v28 = vld [vmem:[%s789_s3] sm:$0xff] }
  0xdf   :  { %v230_v34 = vadd.f32 %v229_v22, %v164_v32 }
  0xe0   :  { %261 = vmatpush.msrb.mxu2 %v239_v29 }
  0xe2   :  { %262 = vmatpush.msrb.mxu2 %v236_v31 }
  0xe4   :  { %263 = vmatpush.msrb.mxu2 %v233_v33 }
  0xe6   :  { %264 = vmatpush.msrb.mxu2 %v230_v34 }
  0xe8   :  { %265 = vmatpush.msrb.mxu2 %v227_v35 }
  0xea   :  { %266 = vmatpush.msrb.mxu2 %v224_v36 }
  0xec   :  { %267 = vmatpush.msrb.mxu2 %v221_v37 }
  0xee   :  { %268 = vmatpush.msrb.mxu2 %v218_v38 }
  0xf0   :  { %269 = vmatpush.msrb.mxu2 %v215_v39 }
  0xf2   :  { %270 = vmatpush.msrb.mxu2 %v212_v40 }
  0xf4   :  { %271 = vmatpush.msrb.mxu2 %v209_v1 }
  0xf6   :  { %272 = vmatpush.msrb.mxu2 %v206_v60 }
  0xf7   :  { %273 = vmatmul.f32.vlgmr.msrb.gmra.mxu2 %v253_v41 }
  0xff   :  { %276 = vmatmul.f32.gmra.mxu2 %v254_v42 }
 0x107   :  { %279 = vmatmul.f32.gmra.mxu2 %v255_v43 }
 0x10f   :  { %282 = vmatmul.f32.gmra.mxu2 %v256_v44 }
 0x17a   :  { %v274_v45 = vpop.f32.mrf.mxu2 }
 0x17b   :  { %v287_v46 = vsel %vm286_vm1, %v274_v45, 0.0 }
 0x17c   :  { %288 = vadd.xlane.f32.xlu0 %v287_v46 }
 0x182   :  { %v277_v47 = vpop.f32.mrf.mxu2 }
 0x183   :  { %v290_v48 = vsel %vm286_vm1, %v277_v47, 0.0 }
 0x184   :  { %291 = vadd.xlane.f32.xlu0 %v290_v48  ;;  %v329_v48 = vld [vmem:[%s789_s3 + $0x10] sm:$0xff] }
 0x18a   :  { %v280_v49 = vpop.f32.mrf.mxu2 }
 0x18b   :  { %v293_v50 = vsel %vm286_vm1, %v280_v49, 0.0 }
 0x18c   :  { %294 = vadd.xlane.f32.xlu1 %v293_v50 }
 0x192   :  { %v283_v51 = vpop.f32.mrf.mxu2 }
 0x193   :  { %v296_v52 = vsel %vm286_vm1, %v283_v51, 0.0 }
 0x194   :  { %297 = vadd.xlane.f32.xlu1 %v296_v52 }
 0x1ef   :  { %v289_v53 = vpop.xlane.xlu0 %288 }
 0x1f0   :  { %v299_v54 = vmul.f32 0.03125, %v289_v53 }
 0x1f2   :  { %v725_v55 = vsub.f32 %v274_v45, %v299_v54 }
 0x1f4   :  { %v307_v56 = vmul.f32 %v725_v55, %v725_v55 }
 0x1f6   :  { %v311_v57 = vsel %vm286_vm1, %v307_v56, 0.0  ;;  %v330_v56 = vld [vmem:[%s789_s3 + $0x18] sm:$0xff] }
 0x1f7   :  { %312 = vadd.xlane.f32.xlu2 %v311_v57  ;;  %v292_v58 = vpop.xlane.xlu0 %291 }
 0x1f8   :  { %v300_v59 = vmul.f32 0.03125, %v292_v58 }
 0x1fa   :  { %v730_v60 = vsub.f32 %v277_v47, %v300_v59 }
 0x1fc   :  { %v308_v61 = vmul.f32 %v730_v60, %v730_v60 }
 0x1fe   :  { %v314_v62 = vsel %vm286_vm1, %v308_v61, 0.0 }
 0x1ff   :  { %315 = vadd.xlane.f32.xlu2 %v314_v62  ;;  %v295_v63 = vpop.xlane.xlu1 %294 }
 0x200   :  { %v301_v0 = vmul.f32 0.03125, %v295_v63 }
 0x202   :  { %v735_v1 = vsub.f32 %v280_v49, %v301_v0 }
 0x204   :  { %v309_v2 = vmul.f32 %v735_v1, %v735_v1 }
 0x206   :  { %v317_v3 = vsel %vm286_vm1, %v309_v2, 0.0 }
 0x207   :  { %318 = vadd.xlane.f32.xlu0 %v317_v3  ;;  %v298_v4 = vpop.xlane.xlu1 %297 }
 0x208   :  { %v302_v5 = vmul.f32 0.03125, %v298_v4 }
 0x20a   :  { %v740_v6 = vsub.f32 %v283_v51, %v302_v5 }
 0x20c   :  { %v310_v7 = vmul.f32 %v740_v6, %v740_v6 }
 0x20e   :  { %v320_v8 = vsel %vm286_vm1, %v310_v7, 0.0 }
 0x20f   :  { %321 = vadd.xlane.f32.xlu1 %v320_v8 }
 0x228   :  { %410 = vperm.xlu1 %481, %v328_v10  }
 0x230   :  { %482 = vset.pattern.permute.xlu1 %v495_v9 }
 0x26a   :  { %v313_v12 = vpop.xlane.xlu2 %312 }
 0x26b   :  { %v323_v13 = vmul.f32 0.03125, %v313_v12 }
 0x26d   :  { %v331_v14 = vadd.f32 1e-05, %v323_v13 }
 0x26f   :  { %487 = vrsqrt.f32 %v331_v14  ;;  %vm341_vm3 = vweird.f32 %v331_v14 }
 0x272   :  { %v316_v15 = vpop.xlane.xlu2 %315 }
 0x273   :  { %v324_v16 = vmul.f32 0.03125, %v316_v15 }
 0x275   :  { %v488_v17 = vpop.eup %487  ;;  %v332_v18 = vadd.f32 1e-05, %v324_v16 }
 0x276   :  { %v336_v19 = vmul.f32 %v488_v17, %v331_v14  ;;  %vm342_vm2 = vweird.f32 %v488_v17 }
 0x277   :  { %489 = vrsqrt.f32 %v332_v18  ;;  %vm343_vm4 = vmor %vm341_vm3, %vm342_vm2  ;;  %vm351_vm6 = vweird.f32 %v332_v18 }
 0x278   :  { %v337_v20 = vmul.f32 %v488_v17, %v336_v19 }
 0x27a   :  { %v338_v21 = vmul.f32 0.5, %v337_v20  ;;  %v319_v22 = vpop.xlane.xlu0 %318 }
 0x27b   :  { %v325_v23 = vmul.f32 0.03125, %v319_v22 }
 0x27c   :  { %v339_v24 = vsub.f32 1.5, %v338_v21 }
 0x27d   :  { %v490_v25 = vpop.eup %489  ;;  %v333_v26 = vadd.f32 1e-05, %v325_v23 }
 0x27e   :  { %v346_v27 = vmul.f32 %v490_v25, %v332_v18  ;;  %v340_v29 = vmul.f32 %v488_v17, %v339_v24  ;;  %vm352_vm5 = vweird.f32 %v490_v25 }
 0x27f   :  { %491 = vrsqrt.f32 %v333_v26  ;;  %vm353_vm7 = vmor %vm351_vm6, %vm352_vm5  ;;  %vm361_vm9 = vweird.f32 %v333_v26 }
 0x280   :  { %v347_v30 = vmul.f32 %v490_v25, %v346_v27  ;;  %v344_v31 = vsel %vm343_vm4, %v488_v17, %v340_v29 }
 0x281   :  { %v375_v32 = vmul.f32 %v344_v31, %v327_v28 }
 0x282   :  { %v348_v33 = vmul.f32 0.5, %v347_v30  ;;  %v322_v34 = vpop.xlane.xlu1 %321 }
 0x283   :  { %v326_v35 = vmul.f32 0.03125, %v322_v34  ;;  %381 = vperm.xlu2 %478, %v375_v32  }
 0x284   :  { %v349_v36 = vsub.f32 1.5, %v348_v33 }
 0x285   :  { %v492_v37 = vpop.eup %491  ;;  %v334_v38 = vadd.f32 1e-05, %v326_v35 }
 0x286   :  { %v356_v39 = vmul.f32 %v492_v37, %v333_v26  ;;  %v350_v40 = vmul.f32 %v490_v25, %v349_v36  ;;  %vm362_vm8 = vweird.f32 %v492_v37 }
 0x287   :  { %493 = vrsqrt.f32 %v334_v38  ;;  %vm363_vm10 = vmor %vm361_vm9, %vm362_vm8  ;;  %vm371_vm12 = vweird.f32 %v334_v38 }
 0x288   :  { %v357_v41 = vmul.f32 %v492_v37, %v356_v39  ;;  %v354_v42 = vsel %vm353_vm7, %v490_v25, %v350_v40 }
 0x289   :  { %v376_v43 = vmul.f32 %v354_v42, %v328_v10 }
 0x28a   :  { %v358_v44 = vmul.f32 0.5, %v357_v41 }
 0x28b   :  { %480 = vset.pattern.permute.xlu2 %v496_v11  ;;  %386 = vperm.xlu0 %479, %v376_v43  }
 0x28c   :  { %v359_v45 = vsub.f32 1.5, %v358_v44  ;;  %405 = vperm.xlu2 %480, %v327_v28  }
 0x28d   :  { %v494_v46 = vpop.eup %493 }
 0x28e   :  { %v366_v47 = vmul.f32 %v494_v46, %v334_v38  ;;  %v360_v49 = vmul.f32 %v492_v37, %v359_v45  ;;  %vm372_vm11 = vweird.f32 %v494_v46 }
 0x28f   :  { %vm373_vm13 = vmor %vm371_vm12, %vm372_vm11 }
 0x290   :  { %v367_v50 = vmul.f32 %v494_v46, %v366_v47  ;;  %v364_v51 = vsel %vm363_vm10, %v492_v37, %v360_v49 }
 0x291   :  { %v377_v52 = vmul.f32 %v364_v51, %v329_v48 }
 0x292   :  { %v368_v53 = vmul.f32 0.5, %v367_v50 }
 0x293   :  { %391 = vperm.xlu1 %482, %v377_v52   ;;  %486 = vset.pattern.permute.xlu0 %v496_v11 }
 0x294   :  { %v369_v54 = vsub.f32 1.5, %v368_v53  ;;  %483 = vset.pattern.permute.xlu2 %v495_v9 }
 0x296   :  { %v370_v57 = vmul.f32 %v494_v46, %v369_v54 }
 0x298   :  { %v374_v58 = vsel %vm373_vm13, %v494_v46, %v370_v57 }
 0x299   :  { %v378_v59 = vmul.f32 %v374_v58, %v330_v56 }
 0x29a   :  { %v411_v2 = vpop.permute.xlu1 %410 }
 0x29b   :  { %485 = vset.pattern.permute.xlu1 %v496_v11  ;;  %396 = vperm.xlu2 %483, %v378_v59  }
 0x29c   :  { %420 = vperm.xlu1 %485, %v330_v56  }
 0x2a3   :  { %484 = vset.pattern.permute.xlu2 %v496_v11 }
 0x2a4   :  { %415 = vperm.xlu2 %484, %v329_v48  }
 0x2dd   :  { %v382_v61 = vpop.permute.xlu2 %381 }
 0x2de   :  { %v399_v62 = vmul.f32 %v382_v61, %v725_v55 }
 0x2e6   :  { %v406_v63 = vpop.permute.xlu2 %405 }
 0x2e7   :  { %v423_v0 = vadd.f32 %v406_v63, %v399_v62 }
 0x2e9   :  { %427 = vst.msk [vmem:[%s790_s4] sm:$0xff] %vm286_vm1, %v423_v0 }
 0x2f5   :  { %v397_v3 = vpop.permute.xlu2 %396 }
 0x2f6   :  { %v402_v11 = vmul.f32 %v397_v3, %v740_v6 }
 0x2fd   :  { %v387_v4 = vpop.permute.xlu0 %386 }
 0x2fe   :  { %v400_v5 = vmul.f32 %v387_v4, %v730_v60  ;;  %v416_v55 = vpop.permute.xlu2 %415 }
 0x300   :  { %v424_v7 = vadd.f32 %v411_v2, %v400_v5 }
 0x302   :  { %428 = vst.msk [vmem:[%s790_s4 + $0x8] sm:$0xff] %vm286_vm1, %v424_v7 }
 0x305   :  { %v392_v8 = vpop.permute.xlu1 %391 }
 0x306   :  { %v401_v9 = vmul.f32 %v392_v8, %v735_v1 }
 0x308   :  { %v425_v10 = vadd.f32 %v416_v55, %v401_v9 }
 0x30a   :  { %429 = vst.msk [vmem:[%s790_s4 + $0x10] sm:$0xff] %vm286_vm1, %v425_v10 }
 0x30e   :  { %v421_v12 = vpop.permute.xlu1 %420 }
 0x30f   :  { %v426_v60 = vadd.f32 %v421_v12, %v402_v11 }
 0x311   :  { %430 = vst.msk [vmem:[%s790_s4 + $0x18] sm:$0xff] %vm286_vm1, %v426_v60 }

</bundles_post_ra>
